<compile_context>
chip_gen: v7x
topology: tpu7x:2x2x1
jax: 0.10.0
libtpu: 0.0.40
codegen_flags: <defaults>
</compile_context>

<pallas_src>
import functools

import jax
import jax.numpy as jnp
from jax.experimental import pallas as pl
from jax.experimental.pallas import tpu as pltpu

_LANE = 128
_SUB = 8
_SMALL_N = 1024        # below this a fused XLA elementwise+reduce is faster


def _round_up(x, m):
    return ((x + m - 1) // m) * m


def _sublane_multiple(dtype):
    # sub-32-bit dtypes pack along sublanes: 8 rows (4B), 16 rows (2B), 32 rows (1B)
    itemsize = jnp.dtype(dtype).itemsize
    return max(_SUB, 32 // max(itemsize, 1))


def _chip_config():
    """(num_grid_cores, max_tile_rows) for the local TPU generation."""
    try:
        kind = jax.devices()[0].device_kind.lower()
    except Exception:
        kind = ""
    if "v7" in kind or "7x" in kind:
        return 2, 4096      # 2 TensorCores; faster HBM -> bigger tiles amortise overhead
    return 1, 2048          # v5e / v6e: single TensorCore, no point splitting the grid


def _mse_kernel(a_ref, b_ref, out_ref, acc_ref, *,
                total_rows, tile_rows, tiles_per_core):
    c = pl.program_id(0)    # (possibly) core-parallel axis
    i = pl.program_id(1)    # sequential reduction axis

    @pl.when(i == 0)
    def _():
        acc_ref[...] = jnp.zeros_like(acc_ref)

    # widen in VMEM; the HBM DMA stayed in each input's native dtype
    d = a_ref[...].astype(jnp.float32) - b_ref[...].astype(jnp.float32)
    dd = d * d

    logical_tile = c * tiles_per_core + i
    needs_mask = (logical_tile + 1) * tile_rows > total_rows

    def _accumulate(vals):
        # fold the tile to one (8, 128) vreg of per-lane partials (pure VPU adds,
        # no cross-lane work); cross-lane reduction happens once in the wrapper.
        acc_ref[...] += jnp.sum(vals.reshape(tile_rows // _SUB, _SUB, _LANE), axis=0)

    @pl.when(jnp.logical_not(needs_mask))
    def _():
        # steady state: no iota / compare / select
        _accumulate(dd)

    @pl.when(needs_mask)
    def _():
        # ragged last tile, or a clamped fully-out-of-range tile -> zeroed
        row0 = logical_tile * tile_rows
        local_row = jax.lax.broadcasted_iota(jnp.int32, dd.shape, 0)
        valid = (row0 + local_row) < total_rows
        _accumulate(jnp.where(valid, dd, 0.0))

    @pl.when(i == pl.num_programs(1) - 1)
    def _():
        out_ref[...] = acc_ref[...][None, :, :]


def mse_loss_pallas(space_1, space_2):
    assert space_1.shape == space_2.shape, "MSELoss inputs must have same shape"
    n = space_1.size

    a_flat = space_1.reshape(-1)
    b_flat = space_2.reshape(-1)

    rows = n // _LANE
    if n < _SMALL_N or rows < _SUB:
        # tiny input: pallas_call launch + pipeline priming would dominate
        d = a_flat.astype(jnp.float32) - b_flat.astype(jnp.float32)
        return jnp.sum(d * d) / jnp.float32(n)

    n_main = rows * _LANE

    # Kernel covers the 128-aligned prefix; the <128-element lane remainder is
    # summed with a tiny jnp expression (no full-array jnp.pad copies).
    tail_sum = None
    if n_main < n:
        ta = a_flat[n_main:].astype(jnp.float32)
        tb = b_flat[n_main:].astype(jnp.float32)
        td = ta - tb
        tail_sum = jnp.sum(td * td)
        a_flat = a_flat[:n_main]
        b_flat = b_flat[:n_main]

    a2 = a_flat.reshape(rows, _LANE)   # zero-copy when n % 128 == 0
    b2 = b_flat.reshape(rows, _LANE)

    num_cores, max_tile_rows = _chip_config()
    sub_mult = max(_sublane_multiple(a2.dtype), _sublane_multiple(b2.dtype))
    tile_rows = max(sub_mult, min(max_tile_rows, _round_up(rows, sub_mult)))
    num_tiles = pl.cdiv(rows, tile_rows)
    num_cores = min(num_cores, num_tiles)      # never split a single-tile input
    tiles_per_core = pl.cdiv(num_tiles, num_cores)

    def in_idx(c, i):
        # Clamp so every DMA stays in bounds; logically out-of-range tiles are
        # zeroed by the in-kernel mask.
        return (jnp.minimum(c * tiles_per_core + i, num_tiles - 1), 0)

    if num_cores > 1:
        # v7x only: explicit core-parallel semantics to shard across the 2 TCs.
        core_sem = getattr(pltpu, "CORE_PARALLEL", "parallel")
    else:
        core_sem = "arbitrary"

    partials = pl.pallas_call(
        functools.partial(_mse_kernel, total_rows=rows, tile_rows=tile_rows,
                          tiles_per_core=tiles_per_core),
        out_shape=jax.ShapeDtypeStruct((num_cores, _SUB, _LANE), jnp.float32),
        grid_spec=pltpu.PrefetchScalarGridSpec(
            num_scalar_prefetch=0,
            grid=(num_cores, tiles_per_core),
            in_specs=[
                pl.BlockSpec((tile_rows, _LANE), in_idx),
                pl.BlockSpec((tile_rows, _LANE), in_idx),
            ],
            out_specs=pl.BlockSpec((1, _SUB, _LANE), lambda c, i: (c, 0, 0)),
            scratch_shapes=[pltpu.VMEM((_SUB, _LANE), jnp.float32)],
        ),
        compiler_params=pltpu.CompilerParams(
            dimension_semantics=(core_sem, "arbitrary"),
        ),
    )(a2, b2)

    total = jnp.sum(partials)
    if tail_sum is not None:
        total = total + tail_sum
    return total / jnp.float32(n)


class MSELoss:
    """JAX/Pallas port of the PyTorch wrapper: forward returns (loss, {})."""

    def __init__(self):
        self.name = "mse"

    def forward(self, space_1, space_2):
        loss = mse_loss_pallas(space_1, space_2)
        return (loss, {})

    __call__ = forward


if __name__ == "__main__":
    key = jax.random.PRNGKey(0)
    k1, k2, k3, k4, k5, k6, k7, k8 = jax.random.split(key, 8)

    module = MSELoss()

    # primary SMALL test (single tile, 128-aligned)
    space_1 = jax.random.normal(k1, (2, 4, 16, 16), dtype=jnp.float32)
    space_2 = jax.random.normal(k2, (2, 4, 16, 16), dtype=jnp.float32)
    loss, extras = module(space_1, space_2)
    loss = jax.block_until_ready(loss)
    ref = jnp.mean((space_1 - space_2) ** 2)
    assert jnp.allclose(loss, ref, rtol=1e-5, atol=1e-6), (loss, ref)
    assert extras == {}

    # ragged shape (n % 128 != 0) -> aligned-prefix kernel + wrapper tail sum
    x = jax.random.normal(k3, (3, 5, 7, 11), dtype=jnp.float32)
    y = jax.random.normal(k4, (3, 5, 7, 11), dtype=jnp.float32)
    loss2, _ = module(x, y)
    loss2 = jax.block_until_ready(loss2)
    ref2 = jnp.mean((x - y) ** 2)
    assert jnp.allclose(loss2, ref2, rtol=1e-5, atol=1e-6), (loss2, ref2)

    # multi-tile shape -> exercises accumulator reset, unmasked interior tiles,
    # and the masked ragged last tile
    u = jax.random.normal(k5, (8, 64, 33, 17), dtype=jnp.float32)
    v = jax.random.normal(k6, (8, 64, 33, 17), dtype=jnp.float32)
    loss3, _ = module(u, v)
    loss3 = jax.block_until_ready(loss3)
    ref3 = jnp.mean((u - v) ** 2)
    assert jnp.allclose(loss3, ref3, rtol=1e-4, atol=1e-5), (loss3, ref3)

    # bf16 inputs -> native-dtype DMA + in-kernel widen, 16-row sublane packing
    p = jax.random.normal(k7, (8, 32, 128), dtype=jnp.float32).astype(jnp.bfloat16)
    q = jax.random.normal(k8, (8, 32, 128), dtype=jnp.float32).astype(jnp.bfloat16)
    loss4, _ = module(p, q)
    loss4 = jax.block_until_ready(loss4)
    ref4 = jnp.mean((p.astype(jnp.float32) - q.astype(jnp.float32)) ** 2)
    assert jnp.allclose(loss4, ref4, rtol=1e-4, atol=1e-5), (loss4, ref4)

    # tiny input -> fused XLA fallback path
    s = jax.random.normal(k1, (2, 3, 5), dtype=jnp.float32)
    t = jax.random.normal(k2, (2, 3, 5), dtype=jnp.float32)
    loss5, _ = module(s, t)
    loss5 = jax.block_until_ready(loss5)
    ref5 = jnp.mean((s - t) ** 2)
    assert jnp.allclose(loss5, ref5, rtol=1e-5, atol=1e-6), (loss5, ref5)

    print("KERNEL_OK")
</pallas_src>

<mosaic_0001>
module attributes {stable_mosaic.version = 11 : i64} {
  func.func @_mse_kernel(%arg0: i32, %arg1: i32, %arg2: memref<16x128xf32, #tpu.memory_space<vmem>>, %arg3: memref<16x128xf32, #tpu.memory_space<vmem>>, %arg4: memref<1x8x128xf32, #tpu.memory_space<vmem>>, %arg5: memref<8x128xf32, #tpu.memory_space<vmem>>) attributes {dimension_semantics = [#tpu.dimension_semantics<arbitrary>, #tpu.dimension_semantics<arbitrary>], iteration_bounds = array<i64: 1, 1>, scalar_prefetch = 0 : i64, scratch_operands = 1 : i64, tpu.core_type = #tpu.core_type<tc>, window_params = [{transform_indices = @transform_0, window_bounds = array<i64: 16, 128>}, {transform_indices = @transform_1, window_bounds = array<i64: 16, 128>}, {transform_indices = @transform_2, window_bounds = array<i64: 1, 8, 128>}]} {
    %c0_i32 = arith.constant 0 : i32
    %0 = arith.cmpi eq, %arg1, %c0_i32 : i32
    %1 = arith.extui %0 : i1 to i32
    %c0_i32_0 = arith.constant 0 : i32
    %2 = arith.cmpi ne, %1, %c0_i32_0 : i32
    scf.if %2 {
      %cst = arith.constant 0.000000e+00 : f32
      %20 = vector.broadcast %cst : f32 to vector<8x128xf32>
      %c0_10 = arith.constant 0 : index
      %c0_11 = arith.constant 0 : index
      %21 = vector.load %arg5[%c0_10, %c0_11] : memref<8x128xf32, #tpu.memory_space<vmem>>, vector<8x128xf32>
      tpu.vector_store %arg5[%c0_10, %c0_11], %20 {strides = array<i32>} : memref<8x128xf32, #tpu.memory_space<vmem>>, vector<8x128xf32>,
    } else {
    }
    %c0 = arith.constant 0 : index
    %c0_1 = arith.constant 0 : index
    %3 = vector.load %arg2[%c0, %c0_1] : memref<16x128xf32, #tpu.memory_space<vmem>>, vector<16x128xf32>
    %c0_2 = arith.constant 0 : index
    %c0_3 = arith.constant 0 : index
    %4 = vector.load %arg3[%c0_2, %c0_3] : memref<16x128xf32, #tpu.memory_space<vmem>>, vector<16x128xf32>
    %5 = arith.subf %3, %4 : vector<16x128xf32>
    %6 = arith.mulf %5, %5 : vector<16x128xf32>
    %c1_i32 = arith.constant 1 : i32
    %7 = arith.muli %arg0, %c1_i32 : i32
    %8 = arith.addi %7, %arg1 : i32
    %c1_i32_4 = arith.constant 1 : i32
    %9 = arith.addi %8, %c1_i32_4 : i32
    %c16_i32 = arith.constant 16 : i32
    %10 = arith.muli %9, %c16_i32 : i32
    %c16_i32_5 = arith.constant 16 : i32
    %11 = arith.cmpi sgt, %10, %c16_i32_5 : i32
    %true = arith.constant true
    %12 = arith.xori %11, %true : i1
    %13 = arith.extui %12 : i1 to i32
    %c0_i32_6 = arith.constant 0 : i32
    %14 = arith.cmpi ne, %13, %c0_i32_6 : i32
    scf.if %14 {
      %c0_10 = arith.constant 0 : index
      %c0_11 = arith.constant 0 : index
      %20 = vector.load %arg5[%c0_10, %c0_11] : memref<8x128xf32, #tpu.memory_space<vmem>>, vector<8x128xf32>
      %21 = vector.shape_cast %6 : vector<16x128xf32> to vector<2x8x128xf32>
      %cst = arith.constant dense<0.000000e+00> : vector<8x128xf32>
      %22 = vector.multi_reduction <add>, %21, %cst [0] : vector<2x8x128xf32> to vector<8x128xf32>
      %23 = arith.addf %20, %22 : vector<8x128xf32>
      %c0_12 = arith.constant 0 : index
      %c0_13 = arith.constant 0 : index
      %24 = vector.load %arg5[%c0_12, %c0_13] : memref<8x128xf32, #tpu.memory_space<vmem>>, vector<8x128xf32>
      tpu.vector_store %arg5[%c0_12, %c0_13], %23 {strides = array<i32>} : memref<8x128xf32, #tpu.memory_space<vmem>>, vector<8x128xf32>,
    } else {
    }
    %15 = arith.extui %11 : i1 to i32
    %c0_i32_7 = arith.constant 0 : i32
    %16 = arith.cmpi ne, %15, %c0_i32_7 : i32
    scf.if %16 {
      %c16_i32_10 = arith.constant 16 : i32
      %20 = arith.muli %8, %c16_i32_10 : i32
      %21 = tpu.iota {dimensions = array<i32: 0>} : vector<16x128xi32>
      %22 = vector.broadcast %20 : i32 to vector<16x128xi32>
      %23 = arith.addi %22, %21 : vector<16x128xi32>
      %c16_i32_11 = arith.constant 16 : i32
      %24 = vector.broadcast %c16_i32_11 : i32 to vector<16x128xi32>
      %25 = arith.cmpi slt, %23, %24 : vector<16x128xi32>
      %cst = arith.constant 0.000000e+00 : f32
      %26 = vector.broadcast %cst : f32 to vector<16x128xf32>
      %27 = arith.select %25, %6, %26 : vector<16x128xi1>, vector<16x128xf32>
      %c0_12 = arith.constant 0 : index
      %c0_13 = arith.constant 0 : index
      %28 = vector.load %arg5[%c0_12, %c0_13] : memref<8x128xf32, #tpu.memory_space<vmem>>, vector<8x128xf32>
      %29 = vector.shape_cast %27 : vector<16x128xf32> to vector<2x8x128xf32>
      %cst_14 = arith.constant dense<0.000000e+00> : vector<8x128xf32>
      %30 = vector.multi_reduction <add>, %29, %cst_14 [0] : vector<2x8x128xf32> to vector<8x128xf32>
      %31 = arith.addf %28, %30 : vector<8x128xf32>
      %c0_15 = arith.constant 0 : index
      %c0_16 = arith.constant 0 : index
      %32 = vector.load %arg5[%c0_15, %c0_16] : memref<8x128xf32, #tpu.memory_space<vmem>>, vector<8x128xf32>
      tpu.vector_store %arg5[%c0_15, %c0_16], %31 {strides = array<i32>} : memref<8x128xf32, #tpu.memory_space<vmem>>, vector<8x128xf32>,
    } else {
    }
    %c0_i32_8 = arith.constant 0 : i32
    %17 = arith.cmpi eq, %arg1, %c0_i32_8 : i32
    %18 = arith.extui %17 : i1 to i32
    %c0_i32_9 = arith.constant 0 : i32
    %19 = arith.cmpi ne, %18, %c0_i32_9 : i32
    scf.if %19 {
      %c0_10 = arith.constant 0 : index
      %c0_11 = arith.constant 0 : index
      %20 = vector.load %arg5[%c0_10, %c0_11] : memref<8x128xf32, #tpu.memory_space<vmem>>, vector<8x128xf32>
      %21 = vector.shape_cast %20 : vector<8x128xf32> to vector<1x8x128xf32>
      %c0_12 = arith.constant 0 : index
      %c0_13 = arith.constant 0 : index
      %c0_14 = arith.constant 0 : index
      %22 = vector.load %arg4[%c0_12, %c0_13, %c0_14] : memref<1x8x128xf32, #tpu.memory_space<vmem>>, vector<1x8x128xf32>
      tpu.vector_store %arg4[%c0_12, %c0_13, %c0_14], %21 {strides = array<i32>} : memref<1x8x128xf32, #tpu.memory_space<vmem>>, vector<1x8x128xf32>,
    } else {
    }
    return
  }
  func.func @transform_0(%arg0: i32, %arg1: i32) -> (i32, i32) {
    %c1_i32 = arith.constant 1 : i32
    %0 = arith.muli %arg0, %c1_i32 : i32
    %1 = arith.addi %0, %arg1 : i32
    %c0_i32 = arith.constant 0 : i32
    %2 = arith.minsi %1, %c0_i32 : i32
    %c0_i32_0 = arith.constant 0 : i32
    %c0_i32_1 = arith.constant 0 : i32
    return %2, %c0_i32_0 : i32, i32
  }
  func.func @transform_1(%arg0: i32, %arg1: i32) -> (i32, i32) {
    %c1_i32 = arith.constant 1 : i32
    %0 = arith.muli %arg0, %c1_i32 : i32
    %1 = arith.addi %0, %arg1 : i32
    %c0_i32 = arith.constant 0 : i32
    %2 = arith.minsi %1, %c0_i32 : i32
    %c0_i32_0 = arith.constant 0 : i32
    %c0_i32_1 = arith.constant 0 : i32
    return %2, %c0_i32_0 : i32, i32
  }
  func.func @transform_2(%arg0: i32, %arg1: i32) -> (i32, i32, i32) {
    %c0_i32 = arith.constant 0 : i32
    %c0_i32_0 = arith.constant 0 : i32
    %c0_i32_1 = arith.constant 0 : i32
    return %arg0, %c0_i32, %c0_i32_0 : i32, i32, i32
  }
}

</mosaic_0001>

<bundles_post_ra>
// kernel: tpu_custom_call.1
= control target key start
LH: loop header
LB: loop body
LE: loop exit
PB: predicated region body
PF: predicated region fallthrough
CT: control target
= control target key end

     0   :  { %7 = vsyncpa [#allocation4], 0  ;;  %s261_s0 = inlined_call_operand.hbm [shape: f32[16,128], index: 0, kind: input, shape index: {}]   ;;  %s262_s1 = inlined_call_operand.hbm [shape: f32[16,128], index: 1, kind: input, shape index: {}]   ;;  %s263_s2 = inlined_call_operand.hbm [shape: f32[1,8,128], index: 2, kind: output, shape index: {}]  }
   0x1   :  { %8 = vsyncpa [#allocation7], 0 }
   0x2   :  { %9 = vsyncpa [#allocation5], 0  ;;  %s205_s9 = smov [#allocation3]   ;;  %s133_s13 = scalar_lea.hbm %s261_s0, 256 }
   0x3   :  { %s21_s10 = sshll.u32 %s205_s9, 4  ;;  %p134_p0 = scmp.ne.s32.totalorder %s261_s0, %s133_s13  ;;  %s22_s10 = int_to_ptr.vmem [resolvable:$true] %s21_s10 }
   0x4   :  { %p137_p1 = scmp.lt.u32.totalorder %s133_s13, %s261_s0 }
   0x6   :  { %p139_p2 = pnand %p137_p1, %p134_p0 }
   0x8   :  { %142 = shalt.err (!%p139_p2)
}
   0x9   :  { %s143_s18 = scalar_lea.vmem %s22_s10, 256  ;;  %p148_p4 = scmp.lt.s32.totalorder %s22_s10, %s22_s10 }
   0xa   :  { %p144_p3 = scmp.ne.s32.totalorder %s22_s10, %s143_s18  ;;  %p149_p5 = scmp.lt.s32.totalorder %s143_s18, %s143_s18 }
   0xc   :  { %p150_p6 = por %p149_p5, %p148_p4 }
   0xe   :  { %p151_p7 = pnand %p150_p6, %p144_p3 }
  0x10   :  { %154 = shalt.err (!%p151_p7)
}
  0x11   :  { %s206_s19 = smov 128   ;;  %s207_s20 = smov 8  }
  0x12   :  { %27 = dma.hbm_to_vmem [thread:$0]  %s261_s0, 256, %s22_s10, [#allocation4], %s206_s19, %s206_s19, %s207_s20  }
  0x13   :  { %s208_s23 = smov [#allocation6]   ;;  %s155_s27 = scalar_lea.hbm %s262_s1, 256 }
  0x14   :  { %s39_s24 = sshll.u32 %s208_s23, 4  ;;  %p156_p8 = scmp.ne.s32.totalorder %s262_s1, %s155_s27  ;;  %s40_s24 = int_to_ptr.vmem [resolvable:$true] %s39_s24 }
  0x15   :  { %p159_p9 = scmp.lt.u32.totalorder %s155_s27, %s262_s1 }
  0x17   :  { %p161_p10 = pnand %p159_p9, %p156_p8 }
  0x19   :  { %164 = shalt.err (!%p161_p10)
}
  0x1a   :  { %s165_s4 = scalar_lea.vmem %s40_s24, 256  ;;  %p170_p12 = scmp.lt.s32.totalorder %s40_s24, %s40_s24 }
  0x1b   :  { %p166_p11 = scmp.ne.s32.totalorder %s40_s24, %s165_s4  ;;  %p171_p13 = scmp.lt.s32.totalorder %s165_s4, %s165_s4 }
  0x1d   :  { %p172_p0 = por %p171_p13, %p170_p12 }
  0x1f   :  { %p173_p1 = pnand %p172_p0, %p166_p11 }
  0x21   :  { %176 = shalt.err (!%p173_p1)
}
  0x22   :  { %45 = dma.hbm_to_vmem [thread:$0]  %s262_s1, 256, %s40_s24, [#allocation7], %s206_s19, %s206_s19, %s207_s20  }
  0x23   :  { %199 = dma.done.wait [#allocation4], 256  }
  0x24   :  { %200 = vsyncadd [#allocation4], 4294967040 }
  0x25   :  { %201 = dma.done.wait [#allocation7], 256  }
  0x26   :  { %202 = vsyncadd [#allocation7], 4294967040  ;;  %v65_v0 = vld [vmem:[#allocation3] sm:$0xff]  ;;  %v66_v1 = vld [vmem:[#allocation3 + $0x8] sm:$0xff]  ;;  %s209_s6 = smov [#allocation8]  }
  0x27   :  { %v67_v2 = vld [vmem:[#allocation6] sm:$0xff]  ;;  %v68_v3 = vld [vmem:[#allocation6 + $0x8] sm:$0xff]  ;;  %s114_s7 = sshll.u32 %s209_s6, 4  ;;  %s115_s7 = int_to_ptr.vmem [resolvable:$true] %s114_s7 }
  0x28   :  { %v69_v4 = vsub.f32 %v65_v0, %v67_v2  ;;  %v70_v5 = vsub.f32 %v66_v1, %v68_v3  ;;  %s177_s8 = scalar_lea.vmem %s115_s7, 128  ;;  %p182_p3 = scmp.lt.s32.totalorder %s115_s7, %s115_s7 }
  0x29   :  { %p178_p2 = scmp.ne.s32.totalorder %s115_s7, %s177_s8  ;;  %p183_p4 = scmp.lt.s32.totalorder %s177_s8, %s177_s8 }
  0x2a   :  { %v71_v6 = vmul.f32 %v69_v4, %v69_v4  ;;  %v72_v7 = vmul.f32 %v70_v5, %v70_v5 }
  0x2b   :  { %p184_p5 = por %p183_p4, %p182_p3 }
  0x2c   :  { %v82_v8 = vadd.f32 %v72_v7, %v71_v6 }
  0x2d   :  { %p185_p6 = pnand %p184_p5, %p178_p2 }
  0x2e   :  { %107 = vst [vmem:[#allocation8] sm:$0xff] %v82_v8 }
  0x2f   :  { %188 = shalt.err (!%p185_p6)
}
  0x30   :  { %s189_s10 = scalar_lea.hbm %s263_s2, 128 }
  0x31   :  { %p190_p7 = scmp.ne.s32.totalorder %s263_s2, %s189_s10  ;;  %p193_p8 = scmp.lt.u32.totalorder %s189_s10, %s263_s2 }
  0x33   :  { %p195_p9 = pnand %p193_p8, %p190_p7 }
  0x35   :  { %198 = shalt.err (!%p195_p9)
}
  0x36   :  { %117 = dma.vmem_to_hbm [thread:$0]  %s115_s7, 128, %s263_s2, [#allocation5]  }
  0x37   :  { %203 = dma.done.wait [#allocation5], 128  }
  0x38   :  { %204 = vsyncadd [#allocation5], 4294967168 }
  0x39   :  { %121 = vsyncpa [#allocation4], 1 }
  0x3a   :  { %122 = vsyncpa [#allocation7], 1 }
  0x3b   :  { %123 = vsyncpa [#allocation5], 1 }

</bundles_post_ra>
